<compile_context>
chip_gen: v7x
topology: tpu7x:2x2x1
jax: 0.10.0
libtpu: 0.0.40
codegen_flags: <defaults>
</compile_context>

<pallas_src>
import functools

import jax
import jax.numpy as jnp
from jax import lax
from jax.experimental import pallas as pl
from jax.experimental.pallas import tpu as pltpu


def _round_up(x, k):
    return ((x + k - 1) // k) * k


def _vmem_capacity_bytes():
    try:
        return int(pltpu.get_tpu_info().vmem_capacity_bytes)
    except Exception:  # conservative fallback == v7x per-TC VMEM size
        return 64 * (2 ** 20)


def _pair_con_loss_kernel(f1_ref, f2t_ref, lab_ref, out_ref, *,
                          inv_temperature, n_valid, tn):
    i = pl.program_id(0)

    # F.normalize(x, dim=1): x / max(||x||, eps), eps = 1e-12.
    # rsqrt(max(sumsq, eps^2)) == 1 / max(||x||, eps); rsqrt runs on the EUP slot.
    f1 = f1_ref[...].astype(jnp.float32)                             # (TN, C)
    eps_sq = jnp.float32(1e-24)
    inv_n1 = lax.rsqrt(jnp.maximum(jnp.sum(f1 * f1, axis=1, keepdims=True), eps_sq))

    # Fold 1/temperature into the f1 row scale (avoids an (TN, M) divide) and cast the
    # matmul operand to bf16 so the MXU runs at native rate; accumulation stays f32.
    f1n = (f1 * (inv_n1 * jnp.float32(inv_temperature))).astype(jnp.bfloat16)

    # f2t is pre-normalized bf16 (C, M): streamed-LHS x latched-RHS, no per-step work.
    logits = lax.dot_general(
        f1n, f2t_ref[...],
        dimension_numbers=(((1,), (0,)), ((), ())),
        preferred_element_type=jnp.float32)                          # (TN, M) f32

    # No row-max shift: |logits| <= 1/temperature (wrapper asserts temperature >= 1/80),
    # so exp() stays well inside f32 range; cross entropy is invariant to the shift.
    lse = jnp.log(jnp.sum(jnp.exp(logits), axis=1, keepdims=True))   # (TN, 1)

    labels = lab_ref[...]                                            # (TN, 1) int32
    col_ids = lax.broadcasted_iota(jnp.int32, logits.shape, 1)       # (TN, M)
    picked = jnp.sum(jnp.where(col_ids == labels, logits, 0.0),
                     axis=1, keepdims=True)                          # (TN, 1)

    # Mask zero-padded rows so the wrapper can do a plain sum / n.
    row_ids = i * tn + lax.broadcasted_iota(jnp.int32, (tn, 1), 0)
    out_ref[...] = jnp.where(row_ids < n_valid, lse - picked, jnp.float32(0.0))


def _resident_block_spec(block_shape, index_map):
    # Grid-invariant input: a single buffer halves its VMEM footprint. Fall back to a
    # plain (double-buffered) spec if this jax version's BlockSpec lacks pipeline_mode.
    try:
        return pl.BlockSpec(block_shape, index_map, pipeline_mode=pl.Buffered(1))
    except TypeError:
        return pl.BlockSpec(block_shape, index_map)


def pair_con_loss(f1, f2, mask=None, label=None, temperature=0.07):
    """JAX/Pallas equivalent of PairConLoss.forward."""
    assert mask is not None or label is not None
    # The kernel drops the row-max shift; after L2 normalization logits are bounded by
    # 1/temperature, which must stay within comfortable f32 exp() range.
    assert temperature >= 1.0 / 80.0, "temperature too small for the no-row-max kernel"

    n = f1.shape[0]
    f1 = jnp.reshape(f1, (n, -1))                                    # keep original dtype
    f2 = jnp.reshape(f2, (f2.shape[0], -1)).astype(jnp.float32)
    m, c = f2.shape

    # One-time (grid-invariant) f2 work in the wrapper: L2-normalize, cast to bf16 and
    # lay out as (C, M) so the in-kernel dot contracts (TN,C) x (C,M) with no relayout.
    inv_n2 = lax.rsqrt(jnp.maximum(jnp.sum(f2 * f2, axis=1, keepdims=True),
                                   jnp.float32(1e-24)))
    f2t = jnp.transpose(f2 * inv_n2).astype(jnp.bfloat16)            # (C, M)

    if label is None:
        # torch.nonzero(mask)[:, 1] with exactly one positive per row == per-row argmax.
        # TODO(synk): general torch.nonzero (variable positives per row) has no
        # static-shape equivalent; rows with 0 or >1 positives silently diverge.
        label = jnp.argmax(mask, axis=1)
    label = jnp.reshape(label.astype(jnp.int32), (n, 1))

    # ---- tile the N axis ----------------------------------------------------------
    vmem_cap = _vmem_capacity_bytes()
    f1_isize = jnp.dtype(f1.dtype).itemsize

    def tile_bytes(tn):
        return (2 * (m * c * 2)              # resident bf16 f2 (budget worst case x2)
                + 2 * tn * c * f1_isize      # double-buffered f1 tile DMA
                + tn * c * (4 + 2)           # f32 + bf16 in-kernel f1 copies
                + 2 * tn * m * 4             # logits + exp working set (f32)
                + 4 * tn * 128 * 4)          # lane-padded label/out blocks, x2 buffers

    budget = vmem_cap // 2                   # ~32 MiB on v7x, ~64 MiB on v5e/v6e
    tn = min(1024, _round_up(n, 8))
    if n > 16:
        # At least two tiles so both v7x TensorCores get work on the "parallel" axis.
        tn = min(tn, max(8, _round_up((n + 1) // 2, 8)))
    while tn > 8 and tile_bytes(tn) > budget:
        tn = max(8, _round_up(tn // 2, 8))

    n_pad = _round_up(n, tn)
    if n_pad != n:
        f1 = jnp.pad(f1, ((0, n_pad - n), (0, 0)))
        label = jnp.pad(label, ((0, n_pad - n), (0, 0)))
    num_tiles = n_pad // tn

    kernel = functools.partial(
        _pair_con_loss_kernel,
        inv_temperature=1.0 / float(temperature),
        n_valid=n,
        tn=tn)

    # Explicit VMEM budget with headroom; never request the whole chip (v7x = 64 MiB).
    vmem_limit = int(min(max(2 * tile_bytes(tn), 16 * (2 ** 20)),
                         (3 * vmem_cap) // 4))

    per_row = pl.pallas_call(
        kernel,
        out_shape=jax.ShapeDtypeStruct((n_pad, 1), jnp.float32),
        grid_spec=pltpu.PrefetchScalarGridSpec(
            num_scalar_prefetch=0,
            grid=(num_tiles,),
            in_specs=[
                pl.BlockSpec((tn, c), lambda i: (i, 0)),             # f1 tile (pipelined)
                _resident_block_spec((c, m), lambda i: (0, 0)),      # f2^T resident
                pl.BlockSpec((tn, 1), lambda i: (i, 0)),             # per-tile labels
            ],
            out_specs=pl.BlockSpec((tn, 1), lambda i: (i, 0)),
        ),
        compiler_params=pltpu.CompilerParams(
            dimension_semantics=("parallel",),
            vmem_limit_bytes=vmem_limit,
        ),
    )(f1, f2t, label)

    return (jnp.sum(per_row) / jnp.float32(n)) * jnp.float32(2.0 * temperature)


def _reference_loss(f1, f2, label, temperature=0.07):
    n = f1.shape[0]
    f1 = jnp.reshape(f1, (n, -1)).astype(jnp.float32)
    f2 = jnp.reshape(f2, (f2.shape[0], -1)).astype(jnp.float32)
    f1 = f1 / jnp.maximum(jnp.linalg.norm(f1, axis=1, keepdims=True), 1e-12)
    f2 = f2 / jnp.maximum(jnp.linalg.norm(f2, axis=1, keepdims=True), 1e-12)
    logits = (f1 @ f2.T) / temperature
    logits = logits - jnp.max(logits, axis=1, keepdims=True)
    logp = jax.nn.log_softmax(logits, axis=1)
    ce = -jnp.mean(logp[jnp.arange(n), label])
    return ce * (2.0 * temperature)


if __name__ == "__main__":
    key = jax.random.PRNGKey(0)
    k1, k2, k3 = jax.random.split(key, 3)

    N, C1, H = 8, 4, 8          # features flatten to (8, 32)
    f1 = jax.random.normal(k1, (N, C1, H), dtype=jnp.float32)
    f2 = jax.random.normal(k2, (N, C1, H), dtype=jnp.float32)
    label = jax.random.permutation(k3, jnp.arange(N, dtype=jnp.int32))

    loss = pair_con_loss(f1, f2, label=label, temperature=0.07)
    jax.block_until_ready(loss)

    ref = _reference_loss(f1, f2, label, temperature=0.07)
    # bf16 matmul operands (f32 accumulation) => slightly looser tolerance than pure f32.
    assert jnp.allclose(loss, ref, rtol=5e-2, atol=5e-3), (loss, ref)

    print("KERNEL_OK")
</pallas_src>

<mosaic_0001>
module attributes {stable_mosaic.version = 11 : i64} {
  func.func @_pair_con_loss_kernel(%arg0: i32, %arg1: memref<8x32xf32, #tpu.memory_space<vmem>>, %arg2: memref<32x8xbf16, #tpu.memory_space<vmem>>, %arg3: memref<8x1xi32, #tpu.memory_space<vmem>>, %arg4: memref<8x1xf32, #tpu.memory_space<vmem>>) attributes {dimension_semantics = [#tpu.dimension_semantics<parallel>], iteration_bounds = array<i64: 1>, scalar_prefetch = 0 : i64, scratch_operands = 0 : i64, tpu.core_type = #tpu.core_type<tc>, window_params = [{transform_indices = @transform_0, window_bounds = array<i64: 8, 32>}, {pipeline_mode = #tpu.pipeline_mode<synchronous>, transform_indices = @transform_1, window_bounds = array<i64: 32, 8>}, {transform_indices = @transform_2, window_bounds = array<i64: 8, 1>}, {transform_indices = @transform_3, window_bounds = array<i64: 8, 1>}]} {
    %c0 = arith.constant 0 : index
    %c0_0 = arith.constant 0 : index
    %0 = vector.load %arg1[%c0, %c0_0] : memref<8x32xf32, #tpu.memory_space<vmem>>, vector<8x32xf32>
    %1 = arith.mulf %0, %0 : vector<8x32xf32>
    %cst = arith.constant dense<0.000000e+00> : vector<8xf32>
    %2 = vector.multi_reduction <add>, %1, %cst [1] : vector<8x32xf32> to vector<8xf32>
    %3 = vector.shape_cast %2 : vector<8xf32> to vector<8x1xf32>
    %cst_1 = arith.constant 1.000000e-24 : f32
    %4 = vector.broadcast %cst_1 : f32 to vector<8x1xf32>
    %5 = arith.maximumf %3, %4 : vector<8x1xf32>
    %6 = math.rsqrt %5 : vector<8x1xf32>
    %cst_2 = arith.constant 14.2857141 : f32
    %7 = vector.broadcast %cst_2 : f32 to vector<8x1xf32>
    %8 = arith.mulf %6, %7 : vector<8x1xf32>
    %9 = vector.broadcast %8 : vector<8x1xf32> to vector<8x32xf32>
    %10 = arith.mulf %0, %9 : vector<8x32xf32>
    %11 = arith.truncf %10 : vector<8x32xf32> to vector<8x32xbf16>
    %c0_3 = arith.constant 0 : index
    %c0_4 = arith.constant 0 : index
    %12 = vector.load %arg2[%c0_3, %c0_4] : memref<32x8xbf16, #tpu.memory_space<vmem>>, vector<32x8xbf16>
    %cst_5 = arith.constant dense<0.000000e+00> : vector<8x8xf32>
    %13 = tpu.matmul %11, %12, %cst_5 {dimension_numbers = #tpu.dot_dimension_numbers<[1], [0], [0], [1], [0, 0, 1, 1], [], []>} : vector<8x32xbf16>, vector<32x8xbf16>, vector<8x8xf32> -> vector<8x8xf32>
    %14 = math.exp %13 : vector<8x8xf32>
    %cst_6 = arith.constant dense<0.000000e+00> : vector<8xf32>
    %15 = vector.multi_reduction <add>, %14, %cst_6 [1] : vector<8x8xf32> to vector<8xf32>
    %16 = vector.shape_cast %15 : vector<8xf32> to vector<8x1xf32>
    %17 = math.log %16 : vector<8x1xf32>
    %c0_7 = arith.constant 0 : index
    %c0_8 = arith.constant 0 : index
    %18 = vector.load %arg3[%c0_7, %c0_8] : memref<8x1xi32, #tpu.memory_space<vmem>>, vector<8x1xi32>
    %19 = tpu.iota {dimensions = array<i32: 1>} : vector<8x8xi32>
    %20 = vector.broadcast %18 : vector<8x1xi32> to vector<8x8xi32>
    %21 = arith.cmpi eq, %19, %20 : vector<8x8xi32>
    %cst_9 = arith.constant 0.000000e+00 : f32
    %22 = vector.broadcast %cst_9 : f32 to vector<8x8xf32>
    %23 = arith.select %21, %13, %22 : vector<8x8xi1>, vector<8x8xf32>
    %cst_10 = arith.constant dense<0.000000e+00> : vector<8xf32>
    %24 = vector.multi_reduction <add>, %23, %cst_10 [1] : vector<8x8xf32> to vector<8xf32>
    %25 = vector.shape_cast %24 : vector<8xf32> to vector<8x1xf32>
    %c8_i32 = arith.constant 8 : i32
    %26 = arith.muli %arg0, %c8_i32 : i32
    %27 = tpu.iota {dimensions = array<i32: 0>} : vector<8x1xi32>
    %28 = vector.broadcast %26 : i32 to vector<8x1xi32>
    %29 = arith.addi %28, %27 : vector<8x1xi32>
    %c8_i32_11 = arith.constant 8 : i32
    %30 = vector.broadcast %c8_i32_11 : i32 to vector<8x1xi32>
    %31 = arith.cmpi slt, %29, %30 : vector<8x1xi32>
    %32 = arith.subf %17, %25 : vector<8x1xf32>
    %cst_12 = arith.constant 0.000000e+00 : f32
    %33 = vector.broadcast %cst_12 : f32 to vector<8x1xf32>
    %34 = arith.select %31, %32, %33 : vector<8x1xi1>, vector<8x1xf32>
    %c0_13 = arith.constant 0 : index
    %c0_14 = arith.constant 0 : index
    %35 = vector.load %arg4[%c0_13, %c0_14] : memref<8x1xf32, #tpu.memory_space<vmem>>, vector<8x1xf32>
    tpu.vector_store %arg4[%c0_13, %c0_14], %34 {strides = array<i32>} : memref<8x1xf32, #tpu.memory_space<vmem>>, vector<8x1xf32>,
    return
  }
  func.func @transform_0(%arg0: i32) -> (i32, i32) {
    %c0_i32 = arith.constant 0 : i32
    %c0_i32_0 = arith.constant 0 : i32
    return %arg0, %c0_i32 : i32, i32
  }
  func.func @transform_1(%arg0: i32) -> (i32, i32) {
    %c0_i32 = arith.constant 0 : i32
    %c0_i32_0 = arith.constant 0 : i32
    %c0_i32_1 = arith.constant 0 : i32
    return %c0_i32, %c0_i32_0 : i32, i32
  }
  func.func @transform_2(%arg0: i32) -> (i32, i32) {
    %c0_i32 = arith.constant 0 : i32
    %c0_i32_0 = arith.constant 0 : i32
    return %arg0, %c0_i32 : i32, i32
  }
  func.func @transform_3(%arg0: i32) -> (i32, i32) {
    %c0_i32 = arith.constant 0 : i32
    %c0_i32_0 = arith.constant 0 : i32
    return %arg0, %c0_i32 : i32, i32
  }
}

</mosaic_0001>

<bundles_post_ra>
// kernel: tpu_custom_call.1
= control target key start
LH: loop header
LB: loop body
LE: loop exit
PB: predicated region body
PF: predicated region fallthrough
CT: control target
= control target key end

     0   :  { %vm17_vm0 = vcmask 261120   ;;  %v144_v4 = vmov 0.0   ;;  %vm145_vm1 = vmmov 0   ;;  %v146_v6 = vmov 0   ;;  %s184_s0 = inlined_call_operand.vmem [shape: f32[8,32], index: 0, kind: input, shape index: {}]   ;;  %s185_s1 = inlined_call_operand.vmem [shape: bf16[32,8], index: 1, kind: input, shape index: {}]   ;;  %s186_s2 = inlined_call_operand.vmem [shape: s32[8,1], index: 2, kind: input, shape index: {}]   ;;  %s187_s3 = inlined_call_operand.vmem [shape: f32[8,1], index: 3, kind: output, shape index: {}]  }
   0x1   :  { %v15_v0 = vld [vmem:[%s184_s0] sm:$0xff]  ;;  %124 = vmatprep.subr.bf16.mxu0 %v144_v4  ;;  %v137_v5 = vld [vmem:[%s185_s1 + $0x8] sm:$0xff]   ;;  %128 = vmatprep.mubr.msk.bf16.mxu0 %vm145_vm1, %v144_v4  ;;  %v94_v19 = vlaneseq  ;;  %vm87_vm3 = vcmask 64512   ;;  %vm112_vm4 = vcmask 7168  }
   0x2   :  { %v16_v1 = vmul.f32 %v15_v0, %v15_v0  ;;  %v136_v3 = vld [vmem:[%s185_s1] sm:$0xff]   ;;  %135 = vset.pattern.permute.xlu0 %v146_v6 }
   0x3   :  { %125 = vmatpush3.bf16.msra.mxu0 %v136_v3  ;;  %v93_v7 = vld [vmem:[%s186_s2] sm:$0xff]  ;;  %v95_v20 = vand.u32 127, %v94_v19 }
   0x4   :  { %v18_v2 = vsel %vm17_vm0, %v16_v1, 0.0  ;;  %126 = vmatprep.subr.bf16.mxu0 %v144_v4 }
   0x5   :  { %19 = vadd.xlane.f32.xlu0 %v18_v2 }
   0x7   :  { %127 = vmatpush3.bf16.msra.mxu0 %v137_v5 }
  0x1b   :  { %97 = vperm.xlu0 %135, %v93_v7  }
  0x92   :  { %v20_v8 = vpop.xlane.xlu0 %19 }
  0x93   :  { %v21_v9 = vmax.f32 %v20_v8, 1e-24 }
  0x95   :  { %138 = vrsqrt.f32 %v21_v9 }
  0x9a   :  { %v98_v21 = vpop.permute.xlu0 %97 }
  0x9b   :  { %vm99_vm2 = vcmp.eq.s32.totalorder %v95_v20, %v98_v21 }
  0x9f   :  { %v139_v10 = vpop.eup %138 }
  0xa0   :  { %v23_v11 = vmul.f32 14.285714, %v139_v10 }
  0xa2   :  { %v24_v12 = vmul.f32 %v23_v11, %v15_v0 }
  0xa4   :  { %v25_v13 = vpack.c.bf16 %v24_v12, %v24_v12 }
  0xa6   :  { %129 = vmatmul.mubr.msk.bf16.vlgmr.msra.gmra.mrb[0].mxu0 %vm17_vm0, %v25_v13 }
 0x179   :  { %v79_v14 = vpop.f32.mrb[0].mxu0 }
 0x17a   :  { %v85_v15 = vmul.f32 1.442695, %v79_v14  ;;  %v130_v16 = vpop.f32.mrb[1].mxu0  ;;  %v100_v24 = vsel %vm99_vm2, %v79_v14, 0.0 }
 0x17b   :  { %v82_v17 = vpop.f32.mrb[2].mxu0  ;;  %v101_v25 = vsel %vm87_vm3, %v100_v24, 0.0 }
 0x17c   :  { %140 = vpow2.f32 %v85_v15  ;;  %v131_v18 = vpop.f32.mrb[3].mxu0 }
 0x186   :  { %v141_v22 = vpop.eup %140 }
 0x187   :  { %v88_v23 = vsel %vm87_vm3, %v141_v22, 0.0 }
 0x188   :  { %89 = vadd.xlane.f32.xlu1 %v88_v23 }
 0x18c   :  { %102 = vadd.xlane.f32.xlu1 %v101_v25 }
 0x215   :  { %v90_v26 = vpop.xlane.xlu1 %89 }
 0x216   :  { %142 = vlog2.f32 %v90_v26 }
 0x219   :  { %v103_v29 = vpop.xlane.xlu1 %102 }
 0x220   :  { %v143_v27 = vpop.eup %142 }
 0x221   :  { %v92_v28 = vmul.f32 0.6931472, %v143_v27 }
 0x223   :  { %v110_v30 = vsub.f32 %v92_v28, %v103_v29 }
 0x225   :  { %113 = vst.msk [vmem:[%s187_s3] sm:$0xff] %vm112_vm4, %v110_v30 }

</bundles_post_ra>
